<compile_context>
chip_gen: v5e
topology: v5e:2x2
jax: 0.10.0
libtpu: 0.0.40
codegen_flags: <defaults>
</compile_context>

<pallas_src>
import jax
import jax.numpy as jnp
from jax.experimental import pallas as pl
from jax.experimental.pallas import tpu as pltpu


_VPU_K_THRESHOLD = 8   # below this, layer-1 matmul is cheaper as VPU FMAs
_LANE = 128            # batch lives on the lane axis of the transposed layout


def _make_pgn_kernel(in_features):
    def pgn_kernel(xT_ref, w1_ref, b1_ref, w2_ref, b2_ref, o_ref):
        # xT: (IN, TB)   w1: (H, IN)   b1: (H, 1)   w2: (A_pad, H)   b2: (A_pad, 1)
        b1 = b1_ref[...].astype(jnp.float32)

        if in_features <= _VPU_K_THRESHOLD:
            # Layer 1 on the VPU: K broadcast FMAs in (feature, batch) layout.
            # xT[k:k+1, :] broadcasts across sublanes (stride-0, free); the
            # w1 column broadcast is H/8 = 16 vregs per k, independent of TB.
            xT = xT_ref[...].astype(jnp.float32)
            w1 = w1_ref[...].astype(jnp.float32)
            h = w1[:, 0:1] * xT[0:1, :] + b1
            for k in range(1, in_features):
                h = h + w1[:, k:k + 1] * xT[k:k + 1, :]
        else:
            # General path: MXU matmul with f32 accumulation.
            h = jnp.dot(w1_ref[...], xT_ref[...].astype(w1_ref.dtype),
                        preferred_element_type=jnp.float32) + b1

        h = jnp.maximum(h, 0.0)                       # (H, TB)

        # Layer 2 on the MXU: (A_pad, H) @ (H, TB) -> (A_pad, TB), f32 acc.
        out = jnp.dot(w2_ref[...], h.astype(w2_ref.dtype),
                      preferred_element_type=jnp.float32)
        out = out + b2_ref[...].astype(jnp.float32)
        o_ref[...] = out.astype(o_ref.dtype)          # lane-dense (A_pad, TB) store

    return pgn_kernel


def pgn_forward(x, w1, b1, w2, b2, *, tile_b=4096):
    """x: (B, in), w1: (in, H), b1: (1, H), w2: (H, A), b2: (1, A) -> (B, A)."""
    B, IN = x.shape
    H = w1.shape[1]
    A = w2.shape[1]

    # Output rows padded to 8 sublanes only (not 128 lanes like before).
    A_pad = max(8, ((A + 7) // 8) * 8)

    # Transposed parameter layouts for the (feature, batch) kernel layout.
    w1T = w1.T                                  # (H, IN)
    b1c = b1.T                                  # (H, 1)
    w2T = w2.T                                  # (A, H)
    b2c = b2.T                                  # (A, 1)
    if A_pad != A:
        w2T = jnp.pad(w2T, ((0, A_pad - A), (0, 0)))
        b2c = jnp.pad(b2c, ((0, A_pad - A), (0, 0)))

    # Batch tiling: batch is the lane axis, so TB must be a multiple of 128.
    n_tiles = max(1, -(-B // tile_b))
    if n_tiles == 1 and B > 2 * _LANE:
        n_tiles = 2                             # v7x: feed both TensorCores
    TB = (((B + n_tiles - 1) // n_tiles + _LANE - 1) // _LANE) * _LANE
    B_pad = n_tiles * TB

    xT = x.T                                    # (IN, B)
    if B_pad != B:
        xT = jnp.pad(xT, ((0, 0), (0, B_pad - B)))

    itemsize = jnp.dtype(x.dtype).itemsize
    flops = 2 * B_pad * (IN * H + H * A_pad)
    bytes_accessed = (IN * B_pad * itemsize                     # xT read
                      + w1T.size * jnp.dtype(w1T.dtype).itemsize
                      + w2T.size * jnp.dtype(w2T.dtype).itemsize
                      + A_pad * B_pad * itemsize)               # output write

    outT = pl.pallas_call(
        _make_pgn_kernel(IN),
        out_shape=jax.ShapeDtypeStruct((A_pad, B_pad), x.dtype),
        grid_spec=pltpu.PrefetchScalarGridSpec(
            num_scalar_prefetch=0,
            grid=(B_pad // TB,),
            in_specs=[
                pl.BlockSpec((IN, TB), lambda i: (0, i)),      # xT: batch-tiled on lanes
                pl.BlockSpec((H, IN), lambda i: (0, 0)),       # w1T: resident
                pl.BlockSpec((H, 1), lambda i: (0, 0)),        # b1: resident
                pl.BlockSpec((A_pad, H), lambda i: (0, 0)),    # w2T (padded): resident
                pl.BlockSpec((A_pad, 1), lambda i: (0, 0)),    # b2 (padded): resident
            ],
            out_specs=pl.BlockSpec((A_pad, TB), lambda i: (0, i)),
        ),
        compiler_params=pltpu.CompilerParams(
            dimension_semantics=("parallel",),        # shard batch tiles across TCs
            vmem_limit_bytes=32 * 1024 * 1024,        # explicit budget (v7x-safe)
        ),
        cost_estimate=pl.CostEstimate(flops=flops, transcendentals=0,
                                      bytes_accessed=bytes_accessed),
    )(xT, w1T, b1c, w2T, b2c)

    # Narrow slice (8 x B_pad) + tiny transpose back to (B, A) logits.
    return outT[:A, :B].T


def init_params(key, input_size, hidden, num_actions, dtype=jnp.float32):
    # Deterministic init mimicking PyTorch's default Linear init:
    # U(-1/sqrt(fan_in), 1/sqrt(fan_in)) for both weight and bias.
    k1, k2, k3, k4 = jax.random.split(key, 4)
    bound1 = 1.0 / (input_size ** 0.5)
    bound2 = 1.0 / (hidden ** 0.5)
    w1 = jax.random.uniform(k1, (input_size, hidden), dtype, -bound1, bound1)
    b1 = jax.random.uniform(k2, (1, hidden), dtype, -bound1, bound1)
    w2 = jax.random.uniform(k3, (hidden, num_actions), dtype, -bound2, bound2)
    b2 = jax.random.uniform(k4, (1, num_actions), dtype, -bound2, bound2)
    return w1, b1, w2, b2


def reference_forward(x, w1, b1, w2, b2):
    h = jnp.maximum(x.astype(jnp.float32) @ w1.astype(jnp.float32)
                    + b1.astype(jnp.float32), 0.0)
    return h @ w2.astype(jnp.float32) + b2.astype(jnp.float32)


if __name__ == "__main__":
    # CartPole: observation dim 4, 2 actions.
    input_size, hidden, num_actions = 4, 128, 2

    key = jax.random.PRNGKey(0)
    kx, kp, kx2 = jax.random.split(key, 3)
    w1, b1, w2, b2 = init_params(kp, input_size, hidden, num_actions)

    # --- f32, small batch (single tile, lane-padded to 128) ---
    x_small = jax.random.normal(kx, (8, input_size), jnp.float32)
    out_small = jax.block_until_ready(pgn_forward(x_small, w1, b1, w2, b2))
    ref_small = reference_forward(x_small, w1, b1, w2, b2)
    assert out_small.shape == (8, num_actions)
    assert jnp.allclose(out_small, ref_small, atol=1e-4, rtol=1e-4)

    # --- f32, larger (amortized) batch: 2 grid tiles + lane padding ---
    x_big = jax.random.normal(kx2, (600, input_size), jnp.float32)
    out_big = jax.block_until_ready(pgn_forward(x_big, w1, b1, w2, b2))
    ref_big = reference_forward(x_big, w1, b1, w2, b2)
    assert out_big.shape == (600, num_actions)
    assert jnp.allclose(out_big, ref_big, atol=1e-4, rtol=1e-4)

    # --- bf16 weights (v6e/v7x MXU fast path), f32 accumulation ---
    # NOTE: h (f32) is cast to bf16 for the layer-2 MXU matmul, so results
    # differ from the f32 reference at ~1e-2 level (fine for a policy net).
    w1_bf, w2_bf = w1.astype(jnp.bfloat16), w2.astype(jnp.bfloat16)
    b1_bf, b2_bf = b1.astype(jnp.bfloat16), b2.astype(jnp.bfloat16)
    out_bf = jax.block_until_ready(pgn_forward(x_big, w1_bf, b1_bf, w2_bf, b2_bf))
    assert out_bf.shape == (600, num_actions)
    assert jnp.allclose(out_bf, ref_big, atol=5e-2, rtol=5e-2)

    print("KERNEL_OK")
</pallas_src>

<mosaic_0001>
module attributes {stable_mosaic.version = 11 : i64} {
  func.func @pgn_kernel(%arg0: i32, %arg1: memref<4x128xf32, #tpu.memory_space<vmem>>, %arg2: memref<128x4xf32, #tpu.memory_space<vmem>>, %arg3: memref<128x1xf32, #tpu.memory_space<vmem>>, %arg4: memref<8x128xf32, #tpu.memory_space<vmem>>, %arg5: memref<8x1xf32, #tpu.memory_space<vmem>>, %arg6: memref<8x128xf32, #tpu.memory_space<vmem>>) attributes {dimension_semantics = [#tpu.dimension_semantics<parallel>], iteration_bounds = array<i64: 1>, scalar_prefetch = 0 : i64, scratch_operands = 0 : i64, tpu.core_type = #tpu.core_type<tc>, window_params = [{transform_indices = @transform_0, window_bounds = array<i64: 4, 128>}, {pipeline_mode = #tpu.pipeline_mode<synchronous>, transform_indices = @transform_1, window_bounds = array<i64: 128, 4>}, {pipeline_mode = #tpu.pipeline_mode<synchronous>, transform_indices = @transform_2, window_bounds = array<i64: 128, 1>}, {pipeline_mode = #tpu.pipeline_mode<synchronous>, transform_indices = @transform_3, window_bounds = array<i64: 8, 128>}, {pipeline_mode = #tpu.pipeline_mode<synchronous>, transform_indices = @transform_4, window_bounds = array<i64: 8, 1>}, {transform_indices = @transform_5, window_bounds = array<i64: 8, 128>}]} {
    %c0 = arith.constant 0 : index
    %c0_0 = arith.constant 0 : index
    %0 = vector.load %arg3[%c0, %c0_0] : memref<128x1xf32, #tpu.memory_space<vmem>>, vector<128x1xf32>
    %c0_1 = arith.constant 0 : index
    %c0_2 = arith.constant 0 : index
    %1 = vector.load %arg1[%c0_1, %c0_2] : memref<4x128xf32, #tpu.memory_space<vmem>>, vector<4x128xf32>
    %c0_3 = arith.constant 0 : index
    %c0_4 = arith.constant 0 : index
    %2 = vector.load %arg2[%c0_3, %c0_4] : memref<128x4xf32, #tpu.memory_space<vmem>>, vector<128x4xf32>
    %3 = vector.extract_strided_slice %2 {offsets = [0, 0], sizes = [128, 1], strides = [1, 1]} : vector<128x4xf32> to vector<128x1xf32>
    %4 = vector.extract_strided_slice %1 {offsets = [0, 0], sizes = [1, 128], strides = [1, 1]} : vector<4x128xf32> to vector<1x128xf32>
    %5 = vector.broadcast %3 : vector<128x1xf32> to vector<128x128xf32>
    %6 = vector.broadcast %4 : vector<1x128xf32> to vector<128x128xf32>
    %7 = arith.mulf %5, %6 : vector<128x128xf32>
    %8 = vector.broadcast %0 : vector<128x1xf32> to vector<128x128xf32>
    %9 = arith.addf %7, %8 : vector<128x128xf32>
    %10 = vector.extract_strided_slice %2 {offsets = [0, 1], sizes = [128, 1], strides = [1, 1]} : vector<128x4xf32> to vector<128x1xf32>
    %11 = vector.extract_strided_slice %1 {offsets = [1, 0], sizes = [1, 128], strides = [1, 1]} : vector<4x128xf32> to vector<1x128xf32>
    %12 = vector.broadcast %10 : vector<128x1xf32> to vector<128x128xf32>
    %13 = vector.broadcast %11 : vector<1x128xf32> to vector<128x128xf32>
    %14 = arith.mulf %12, %13 : vector<128x128xf32>
    %15 = arith.addf %9, %14 : vector<128x128xf32>
    %16 = vector.extract_strided_slice %2 {offsets = [0, 2], sizes = [128, 1], strides = [1, 1]} : vector<128x4xf32> to vector<128x1xf32>
    %17 = vector.extract_strided_slice %1 {offsets = [2, 0], sizes = [1, 128], strides = [1, 1]} : vector<4x128xf32> to vector<1x128xf32>
    %18 = vector.broadcast %16 : vector<128x1xf32> to vector<128x128xf32>
    %19 = vector.broadcast %17 : vector<1x128xf32> to vector<128x128xf32>
    %20 = arith.mulf %18, %19 : vector<128x128xf32>
    %21 = arith.addf %15, %20 : vector<128x128xf32>
    %22 = vector.extract_strided_slice %2 {offsets = [0, 3], sizes = [128, 1], strides = [1, 1]} : vector<128x4xf32> to vector<128x1xf32>
    %23 = vector.extract_strided_slice %1 {offsets = [3, 0], sizes = [1, 128], strides = [1, 1]} : vector<4x128xf32> to vector<1x128xf32>
    %24 = vector.broadcast %22 : vector<128x1xf32> to vector<128x128xf32>
    %25 = vector.broadcast %23 : vector<1x128xf32> to vector<128x128xf32>
    %26 = arith.mulf %24, %25 : vector<128x128xf32>
    %27 = arith.addf %21, %26 : vector<128x128xf32>
    %cst = arith.constant 0.000000e+00 : f32
    %28 = vector.broadcast %cst : f32 to vector<128x128xf32>
    %29 = arith.maximumf %27, %28 : vector<128x128xf32>
    %c0_5 = arith.constant 0 : index
    %c0_6 = arith.constant 0 : index
    %30 = vector.load %arg4[%c0_5, %c0_6] : memref<8x128xf32, #tpu.memory_space<vmem>>, vector<8x128xf32>
    %cst_7 = arith.constant dense<0.000000e+00> : vector<8x128xf32>
    %31 = tpu.matmul %30, %29, %cst_7 {dimension_numbers = #tpu.dot_dimension_numbers<[1], [0], [0], [1], [0, 0, 1, 1], [], []>} : vector<8x128xf32>, vector<128x128xf32>, vector<8x128xf32> -> vector<8x128xf32>
    %c0_8 = arith.constant 0 : index
    %c0_9 = arith.constant 0 : index
    %32 = vector.load %arg5[%c0_8, %c0_9] : memref<8x1xf32, #tpu.memory_space<vmem>>, vector<8x1xf32>
    %33 = vector.broadcast %32 : vector<8x1xf32> to vector<8x128xf32>
    %34 = arith.addf %31, %33 : vector<8x128xf32>
    %c0_10 = arith.constant 0 : index
    %c0_11 = arith.constant 0 : index
    %35 = vector.load %arg6[%c0_10, %c0_11] : memref<8x128xf32, #tpu.memory_space<vmem>>, vector<8x128xf32>
    tpu.vector_store %arg6[%c0_10, %c0_11], %34 {strides = array<i32>} : memref<8x128xf32, #tpu.memory_space<vmem>>, vector<8x128xf32>,
    return
  }
  func.func @transform_0(%arg0: i32) -> (i32, i32) {
    %c0_i32 = arith.constant 0 : i32
    %c0_i32_0 = arith.constant 0 : i32
    return %c0_i32, %arg0 : i32, i32
  }
  func.func @transform_1(%arg0: i32) -> (i32, i32) {
    %c0_i32 = arith.constant 0 : i32
    %c0_i32_0 = arith.constant 0 : i32
    %c0_i32_1 = arith.constant 0 : i32
    return %c0_i32, %c0_i32_0 : i32, i32
  }
  func.func @transform_2(%arg0: i32) -> (i32, i32) {
    %c0_i32 = arith.constant 0 : i32
    %c0_i32_0 = arith.constant 0 : i32
    %c0_i32_1 = arith.constant 0 : i32
    return %c0_i32, %c0_i32_0 : i32, i32
  }
  func.func @transform_3(%arg0: i32) -> (i32, i32) {
    %c0_i32 = arith.constant 0 : i32
    %c0_i32_0 = arith.constant 0 : i32
    %c0_i32_1 = arith.constant 0 : i32
    return %c0_i32, %c0_i32_0 : i32, i32
  }
  func.func @transform_4(%arg0: i32) -> (i32, i32) {
    %c0_i32 = arith.constant 0 : i32
    %c0_i32_0 = arith.constant 0 : i32
    %c0_i32_1 = arith.constant 0 : i32
    return %c0_i32, %c0_i32_0 : i32, i32
  }
  func.func @transform_5(%arg0: i32) -> (i32, i32) {
    %c0_i32 = arith.constant 0 : i32
    %c0_i32_0 = arith.constant 0 : i32
    return %c0_i32, %arg0 : i32, i32
  }
}

</mosaic_0001>

<bundles_post_ra>
// kernel: tpu_custom_call.1
= control target key start
LH: loop header
LB: loop body
LE: loop exit
PB: predicated region body
PF: predicated region fallthrough
CT: control target
= control target key end

     0   :  { %v653_v3 = vmov 0   ;;  %s1066_s0 = inlined_call_operand.vmem [shape: f32[4,128], index: 0, kind: input, shape index: {}]   ;;  %s1067_s1 = inlined_call_operand.vmem [shape: f32[128,4], index: 1, kind: input, shape index: {}]   ;;  %s1068_s2 = inlined_call_operand.vmem [shape: f32[128,1], index: 2, kind: input, shape index: {}]   ;;  %s1069_s3 = inlined_call_operand.vmem [shape: f32[8,128], index: 3, kind: input, shape index: {}]   ;;  %s1070_s4 = inlined_call_operand.vmem [shape: f32[8,1], index: 4, kind: input, shape index: {}]   ;;  %s1071_s5 = inlined_call_operand.hbm [shape: f32[8,128], index: 5, kind: output, shape index: {}]  }
   0x1   :  { %v691_v0 = vld [vmem:[%s1067_s1 + $0x20] sm:$0xff]  ;;  %v696_v1 = vld [vmem:[%s1067_s1 + $0x10] sm:$0xff]  ;;  %605 = vset.pattern.permute.xlu2 %v653_v3  ;;  %604 = vset.pattern.permute.xlu1 %v653_v3 }
   0x2   :  { %v701_v2 = vld [vmem:[%s1067_s1] sm:$0xff]  ;;  %603 = vset.pattern.permute.xlu0 %v653_v3  ;;  %76 = vperm.xlu2 %605, %v691_v0  }
   0x3   :  { %66 = vperm.xlu1 %604, %v696_v1   ;;  %56 = vperm.xlu0 %603, %v701_v2  }
   0x4   :  { %10 = vsyncpa [#allocation3], 0  ;;  %v712_v4 = vld [vmem:[%s1067_s1 + $0x28] sm:$0xff]  ;;  %v717_v5 = vld [vmem:[%s1067_s1 + $0x18] sm:$0xff]  ;;  %v654_v33 = vmov 1   ;;  %v655_v46 = vmov 2  }
   0x5   :  { %v722_v6 = vld [vmem:[%s1067_s1 + $0x8] sm:$0xff]  ;;  %v730_v7 = vld [vmem:[%s1067_s1 + $0x40] sm:$0xff]  ;;  %v735_v8 = vld [vmem:[%s1067_s1 + $0x38] sm:$0xff]  ;;  %v656_v56 = vmov 3   ;;  %s657_s9 = smov [#allocation2]   ;;  %s589_s12 = sshll.u32 %s1071_s5, 4  ;;  %s590_s12 = int_to_ptr.hbm [resolvable:$true] %s589_s12 }
   0x6   :  { %v740_v9 = vld [vmem:[%s1067_s1 + $0x30] sm:$0xff]  ;;  %v748_v10 = vld [vmem:[%s1067_s1 + $0x58] sm:$0xff]  ;;  %v758_v12 = vld [vmem:[%s1067_s1 + $0x48] sm:$0xff] }
   0x7   :  { %v753_v11 = vld [vmem:[%s1067_s1 + $0x50] sm:$0xff]  ;;  %v771_v14 = vld [vmem:[%s1067_s1 + $0x68] sm:$0xff]  ;;  %v776_v15 = vld [vmem:[%s1067_s1 + $0x60] sm:$0xff] }
   0x8   :  { %v766_v13 = vld [vmem:[%s1067_s1 + $0x70] sm:$0xff]  ;;  %v22_v16 = vld [vmem:[%s1068_s2 + $0x8] sm:$0xff]  ;;  %v787_v17 = vld [vmem:[%s1067_s1 + $0x78] sm:$0xff]  ;;  %s587_s1 = sshll.u32 %s657_s9, 4  ;;  %s588_s1 = int_to_ptr.vmem [resolvable:$true] %s587_s1 }
   0x9   :  { %v21_v18 = vld [vmem:[%s1068_s2] sm:$0xff]  ;;  %v23_v20 = vld [vmem:[%s1068_s2 + $0x10] sm:$0xff]  ;;  %v24_v21 = vld [vmem:[%s1068_s2 + $0x18] sm:$0xff] }
   0xa   :  { %81 = vperm.xlu2 %605, %v712_v4   ;;  %v25_v19 = vld [vmem:[%s1068_s2 + $0x20] sm:$0xff]  ;;  %v28_v22 = vld [vmem:[%s1068_s2 + $0x38] sm:$0xff]  ;;  %v26_v23 = vld [vmem:[%s1068_s2 + $0x28] sm:$0xff] }
   0xb   :  { %71 = vperm.xlu1 %604, %v717_v5   ;;  %61 = vperm.xlu0 %603, %v722_v6   ;;  %v27_v24 = vld [vmem:[%s1068_s2 + $0x30] sm:$0xff]  ;;  %v29_v26 = vld [vmem:[%s1068_s2 + $0x40] sm:$0xff]  ;;  %v30_v27 = vld [vmem:[%s1068_s2 + $0x48] sm:$0xff] }
   0xc   :  { %v31_v25 = vld [vmem:[%s1068_s2 + $0x50] sm:$0xff]  ;;  %v34_v28 = vld [vmem:[%s1068_s2 + $0x68] sm:$0xff]  ;;  %v32_v29 = vld [vmem:[%s1068_s2 + $0x58] sm:$0xff] }
   0xd   :  { %v33_v30 = vld [vmem:[%s1068_s2 + $0x60] sm:$0xff]  ;;  %v35_v31 = vld [vmem:[%s1068_s2 + $0x70] sm:$0xff]  ;;  %v36_v32 = vld [vmem:[%s1068_s2 + $0x78] sm:$0xff] }
   0xe   :  { %v857_v40 = vld [vmem:[%s1066_s0] sm:$0xf] }
   0xf   :  { %v865_v44 = vperm.slane %v857_v40, 0 }
  0x12   :  { %96 = vperm.xlu2 %605, %v730_v7  }
  0x13   :  { %91 = vperm.xlu1 %604, %v735_v8   ;;  %86 = vperm.xlu0 %603, %v740_v9  }
  0x1a   :  { %111 = vperm.xlu2 %605, %v748_v10  }
  0x1b   :  { %106 = vperm.xlu1 %604, %v753_v11   ;;  %101 = vperm.xlu0 %603, %v758_v12  }
  0x22   :  { %126 = vperm.xlu2 %605, %v766_v13  }
  0x23   :  { %121 = vperm.xlu1 %604, %v771_v14   ;;  %116 = vperm.xlu0 %603, %v776_v15  }
  0x2a   :  { %158 = vperm.xlu2 %605, %v22_v16  }
  0x2b   :  { %131 = vperm.xlu0 %603, %v787_v17   ;;  %153 = vperm.xlu1 %604, %v21_v18  }
  0x32   :  { %173 = vperm.xlu2 %605, %v25_v19  }
  0x33   :  { %163 = vperm.xlu0 %603, %v23_v20   ;;  %168 = vperm.xlu1 %604, %v24_v21  }
  0x3a   :  { %188 = vperm.xlu2 %605, %v28_v22  }
  0x3b   :  { %178 = vperm.xlu0 %603, %v26_v23   ;;  %183 = vperm.xlu1 %604, %v27_v24  }
  0x42   :  { %203 = vperm.xlu2 %605, %v31_v25  }
  0x43   :  { %193 = vperm.xlu0 %603, %v29_v26   ;;  %198 = vperm.xlu1 %604, %v30_v27  }
  0x4a   :  { %218 = vperm.xlu2 %605, %v34_v28  }
  0x4b   :  { %208 = vperm.xlu0 %603, %v32_v29   ;;  %213 = vperm.xlu1 %604, %v33_v30  }
  0x52   :  { %606 = vset.pattern.permute.xlu2 %v654_v33 }
  0x53   :  { %223 = vperm.xlu0 %603, %v35_v31   ;;  %228 = vperm.xlu1 %604, %v36_v32  }
  0x54   :  { %248 = vperm.xlu2 %606, %v701_v2  }
  0x5b   :  { %607 = vset.pattern.permute.xlu0 %v654_v33  ;;  %608 = vset.pattern.permute.xlu1 %v654_v33 }
  0x5c   :  { %252 = vperm.xlu0 %607, %v722_v6   ;;  %260 = vperm.xlu2 %606, %v717_v5   ;;  %v77_v34 = vpop.permute.xlu2 %76 }
  0x5d   :  { %256 = vperm.xlu1 %608, %v696_v1   ;;  %v139_v51 = vmul.f32 %v865_v44, %v77_v34 }
  0x64   :  { %272 = vperm.xlu0 %607, %v740_v9   ;;  %268 = vperm.xlu2 %606, %v712_v4   ;;  %v841_v35 = vpop.permute.xlu2 %81 }
  0x65   :  { %264 = vperm.xlu1 %608, %v691_v0   ;;  %v140_v28 = vmul.f32 %v865_v44, %v841_v35 }
  0x6c   :  { %284 = vperm.xlu0 %607, %v758_v12   ;;  %280 = vperm.xlu2 %606, %v730_v7   ;;  %v846_v36 = vpop.permute.xlu2 %96 }
  0x6d   :  { %276 = vperm.xlu1 %608, %v735_v8   ;;  %v143_v35 = vmul.f32 %v865_v44, %v846_v36 }
  0x74   :  { %296 = vperm.xlu0 %607, %v776_v15   ;;  %292 = vperm.xlu2 %606, %v748_v10   ;;  %v851_v37 = vpop.permute.xlu2 %111 }
  0x75   :  { %288 = vperm.xlu1 %608, %v753_v11   ;;  %v67_v38 = vpop.permute.xlu1 %66  ;;  %v57_v39 = vpop.permute.xlu0 %56 }
  0x76   :  { %v135_v62 = vmul.f32 %v865_v44, %v57_v39 }
  0x7c   :  { %308 = vperm.xlu0 %607, %v787_v17   ;;  %304 = vperm.xlu2 %606, %v766_v13   ;;  %v861_v41 = vpop.permute.xlu2 %126 }
  0x7d   :  { %300 = vperm.xlu1 %608, %v771_v14   ;;  %v72_v42 = vpop.permute.xlu1 %71  ;;  %v62_v43 = vpop.permute.xlu0 %61 }
  0x7e   :  { %v136_v45 = vmul.f32 %v865_v44, %v62_v43  ;;  %v138_v21 = vmul.f32 %v865_v44, %v72_v42 }
  0x84   :  { %612 = vset.pattern.permute.xlu0 %v655_v46  ;;  %610 = vset.pattern.permute.xlu2 %v655_v46  ;;  %v159_v47 = vpop.permute.xlu2 %158 }
  0x85   :  { %609 = vset.pattern.permute.xlu1 %v655_v46  ;;  %v92_v48 = vpop.permute.xlu1 %91  ;;  %v87_v49 = vpop.permute.xlu0 %86  ;;  %389 = vperm.xlu0 %612, %v748_v10   ;;  %v872_v50 = vadd.f32 %v159_v47, %v136_v45 }
  0x86   :  { %401 = vperm.xlu2 %610, %v766_v13   ;;  %405 = vperm.xlu1 %609, %v787_v17   ;;  %v142_v57 = vmul.f32 %v865_v44, %v92_v48 }
  0x8c   :  { %v174_v52 = vpop.permute.xlu2 %173 }
  0x8d   :  { %v107_v53 = vpop.permute.xlu1 %106  ;;  %v102_v54 = vpop.permute.xlu0 %101  ;;  %369 = vperm.xlu0 %612, %v740_v9   ;;  %v878_v55 = vadd.f32 %v174_v52, %v139_v51 }
  0x8e   :  { %611 = vset.pattern.permute.xlu2 %v656_v56  ;;  %397 = vperm.xlu1 %609, %v771_v14   ;;  %v145_v63 = vmul.f32 %v865_v44, %v107_v53 }
  0x8f   :  { %498 = vperm.xlu2 %611, %v766_v13  }
  0x94   :  { %v189_v58 = vpop.permute.xlu2 %188 }
  0x95   :  { %v122_v59 = vpop.permute.xlu1 %121  ;;  %v117_v60 = vpop.permute.xlu0 %116  ;;  %617 = vset.pattern.permute.xlu0 %v656_v56  ;;  %v885_v61 = vadd.f32 %v189_v58, %v142_v57 }
  0x96   :  { %393 = vperm.xlu1 %609, %v776_v15   ;;  %502 = vperm.xlu0 %617, %v787_v17   ;;  %v137_v17 = vmul.f32 %v865_v44, %v67_v38  ;;  %v144_v38 = vmul.f32 %v865_v44, %v102_v54  ;;  %v147_v36 = vmul.f32 %v865_v44, %v117_v60 }
  0x97   :  { %494 = vperm.xlu2 %611, %v771_v14   ;;  %v148_v14 = vmul.f32 %v865_v44, %v122_v59 }
  0x9c   :  { %v204_v13 = vpop.permute.xlu2 %203 }
  0x9d   :  { %v892_v16 = vpop.permute.xlu0 %131  ;;  %v894_v18 = vadd.f32 %v204_v13, %v145_v63  ;;  %v154_v19 = vpop.permute.xlu1 %153 }
  0x9e   :  { %613 = vset.pattern.permute.xlu1 %v656_v56  ;;  %v231_v20 = vadd.f32 %v154_v19, %v135_v62  ;;  %482 = vperm.xlu0 %617, %v753_v11  }
  0x9f   :  { %614 = vset.pattern.permute.xlu2 %v655_v46  ;;  %490 = vperm.xlu1 %613, %v776_v15   ;;  %v911_v15 = vperm.slane %v857_v40, 1 }
  0xa0   :  { %385 = vperm.xlu2 %614, %v753_v11   ;;  %v141_v11 = vmul.f32 %v865_v44, %v87_v49 }
  0xa4   :  { %v219_v22 = vpop.permute.xlu2 %218 }
  0xa5   :  { %v164_v23 = vpop.permute.xlu0 %163  ;;  %v904_v24 = vadd.f32 %v219_v22, %v148_v14  ;;  %v169_v25 = vpop.permute.xlu1 %168 }
  0xa6   :  { %v233_v26 = vadd.f32 %v164_v23, %v137_v17  ;;  %v234_v27 = vadd.f32 %v169_v25, %v138_v21  ;;  %462 = vperm.xlu0 %617, %v712_v4  }
  0xa7   :  { %486 = vperm.xlu1 %613, %v748_v10  }
  0xa8   :  { %381 = vperm.xlu2 %614, %v758_v12  }
  0xad   :  { %v179_v29 = vpop.permute.xlu0 %178  ;;  %v184_v30 = vpop.permute.xlu1 %183 }
  0xae   :  { %v236_v31 = vadd.f32 %v179_v29, %v140_v28  ;;  %v237_v32 = vadd.f32 %v184_v30, %v141_v11  ;;  %622 = vset.pattern.permute.xlu0 %v655_v46  ;;  %v249_v33 = vpop.permute.xlu2 %248 }
  0xaf   :  { %v312_v34 = vmul.f32 %v911_v15, %v249_v33  ;;  %615 = vset.pattern.permute.xlu1 %v655_v46  ;;  %349 = vperm.xlu0 %622, %v722_v6  }
  0xb0   :  { %616 = vset.pattern.permute.xlu2 %v656_v56  ;;  %377 = vperm.xlu1 %615, %v730_v7  }
  0xb1   :  { %v921_v10 = vadd.f32 %v312_v34, %v231_v20  ;;  %478 = vperm.xlu2 %616, %v758_v12   ;;  %v146_v12 = vmul.f32 %v865_v44, %v851_v37 }
  0xb5   :  { %v194_v39 = vpop.permute.xlu0 %193  ;;  %v199_v42 = vpop.permute.xlu1 %198 }
  0xb6   :  { %v239_v43 = vadd.f32 %v194_v39, %v143_v35  ;;  %v927_v45 = vadd.f32 %v199_v42, %v144_v38  ;;  %v261_v47 = vpop.permute.xlu2 %260  ;;  %v149_v38 = vmul.f32 %v865_v44, %v861_v41 }
  0xb7   :  { %v315_v48 = vmul.f32 %v911_v15, %v261_v47  ;;  %626 = vset.pattern.permute.xlu0 %v653_v3 }
  0xb8   :  { %373 = vperm.xlu1 %615, %v735_v8  }
  0xb9   :  { %v932_v49 = vadd.f32 %v315_v48, %v234_v27  ;;  %474 = vperm.xlu2 %616, %v730_v7  }
  0xbd   :  { %v209_v51 = vpop.permute.xlu0 %208  ;;  %v214_v52 = vpop.permute.xlu1 %213 }
  0xbe   :  { %v938_v53 = vadd.f32 %v209_v51, %v146_v12  ;;  %v940_v54 = vadd.f32 %v214_v52, %v147_v36  ;;  %v269_v57 = vpop.permute.xlu2 %268 }
  0xbf   :  { %v317_v3 = vmul.f32 %v911_v15, %v269_v57 }
  0xc0   :  { %618 = vset.pattern.permute.xlu1 %v656_v56 }
  0xc1   :  { %v944_v58 = vadd.f32 %v317_v3, %v236_v31  ;;  %619 = vset.pattern.permute.xlu2 %v655_v46  ;;  %470 = vperm.xlu1 %618, %v735_v8  }
  0xc2   :  { %365 = vperm.xlu2 %619, %v712_v4  }
  0xc5   :  { %v224_v7 = vpop.permute.xlu0 %223  ;;  %v229_v37 = vpop.permute.xlu1 %228 }
  0xc6   :  { %v281_v59 = vpop.permute.xlu2 %280 }
  0xc7   :  { %v320_v60 = vmul.f32 %v911_v15, %v281_v59 }
  0xc9   :  { %v950_v62 = vadd.f32 %v320_v60, %v239_v43  ;;  %466 = vperm.xlu1 %618, %v740_v9   ;;  %v245_v43 = vadd.f32 %v224_v7, %v149_v38 }
  0xca   :  { %361 = vperm.xlu2 %619, %v691_v0  }
  0xce   :  { %v253_v63 = vpop.permute.xlu0 %252  ;;  %v954_v13 = vpop.permute.xlu2 %292 }
  0xcf   :  { %v313_v19 = vmul.f32 %v911_v15, %v253_v63  ;;  %v257_v20 = vpop.permute.xlu1 %256 }
  0xd0   :  { %v314_v8 = vmul.f32 %v911_v15, %v257_v20 }
  0xd1   :  { %v959_v4 = vadd.f32 %v313_v19, %v872_v50  ;;  %620 = vset.pattern.permute.xlu1 %v655_v46 }
  0xd2   :  { %v962_v14 = vadd.f32 %v314_v8, %v233_v26  ;;  %621 = vset.pattern.permute.xlu2 %v656_v56  ;;  %357 = vperm.xlu1 %620, %v717_v5  }
  0xd3   :  { %458 = vperm.xlu2 %621, %v691_v0  }
  0xd6   :  { %v273_v9 = vpop.permute.xlu0 %272  ;;  %v305_v17 = vpop.permute.xlu2 %304 }
  0xd7   :  { %v318_v21 = vmul.f32 %v911_v15, %v273_v9  ;;  %v265_v22 = vpop.permute.xlu1 %264 }
  0xd8   :  { %v316_v23 = vmul.f32 %v911_v15, %v265_v22 }
  0xd9   :  { %v969_v25 = vadd.f32 %v318_v21, %v237_v32 }
  0xda   :  { %v972_v50 = vadd.f32 %v316_v23, %v878_v55  ;;  %353 = vperm.xlu1 %620, %v696_v1  }
  0xdb   :  { %454 = vperm.xlu2 %621, %v717_v5  }
  0xde   :  { %v976_v26 = vpop.permute.xlu0 %284 }
  0xdf   :  { %v277_v27 = vpop.permute.xlu1 %276 }
  0xe0   :  { %v319_v0 = vmul.f32 %v911_v15, %v277_v27  ;;  %v402_v11 = vpop.permute.xlu2 %401 }
  0xe2   :  { %v980_v28 = vadd.f32 %v319_v0, %v885_v61  ;;  %623 = vset.pattern.permute.xlu1 %v656_v56 }
  0xe3   :  { %624 = vset.pattern.permute.xlu2 %v655_v46  ;;  %450 = vperm.xlu1 %623, %v696_v1   ;;  %v992_v1 = vperm.slane %v857_v40, 2 }
  0xe4   :  { %345 = vperm.xlu2 %624, %v701_v2  }
  0xe5   :  { %v423_v47 = vmul.f32 %v992_v1, %v402_v11 }
  0xe6   :  { %v297_v55 = vpop.permute.xlu0 %296 }
  0xe7   :  { %v289_v29 = vpop.permute.xlu1 %288  ;;  %v324_v20 = vmul.f32 %v911_v15, %v297_v55 }
  0xe8   :  { %v322_v55 = vmul.f32 %v911_v15, %v289_v29 }
  0xe9   :  { %v499_v5 = vpop.permute.xlu2 %498  ;;  %v340_v21 = vadd.f32 %v324_v20, %v940_v54 }
  0xeb   :  { %446 = vperm.xlu1 %623, %v722_v6   ;;  %v326_v6 = vmul.f32 %v911_v15, %v305_v17 }
  0xec   :  { %625 = vset.pattern.permute.xlu2 %v656_v56  ;;  %v1000_v56 = vperm.slane %v857_v40, 3 }
  0xed   :  { %442 = vperm.xlu2 %625, %v701_v2   ;;  %v150_v2 = vmul.f32 %v865_v44, %v892_v16  ;;  %v342_v36 = vadd.f32 %v326_v6, %v245_v43  ;;  %v338_v6 = vadd.f32 %v322_v55, %v894_v18 }
  0xee   :  { %v309_v30 = vpop.permute.xlu0 %308  ;;  %v520_v51 = vmul.f32 %v1000_v56, %v499_v5  ;;  %v323_v5 = vmul.f32 %v911_v15, %v954_v13 }
  0xef   :  { %v301_v61 = vpop.permute.xlu1 %300  ;;  %v327_v39 = vmul.f32 %v911_v15, %v309_v30  ;;  %v246_v48 = vadd.f32 %v229_v37, %v150_v2  ;;  %v439_v16 = vadd.f32 %v423_v47, %v342_v36 }
  0xf0   :  { %v325_v42 = vmul.f32 %v911_v15, %v301_v61  ;;  %v321_v61 = vmul.f32 %v911_v15, %v976_v26  ;;  %v339_v38 = vadd.f32 %v323_v5, %v938_v53 }
  0xf1   :  { %v495_v31 = vpop.permute.xlu2 %494  ;;  %v343_v52 = vadd.f32 %v327_v39, %v246_v48  ;;  %v536_v19 = vadd.f32 %v520_v51, %v439_v16 }
  0xf2   :  { %v341_v44 = vadd.f32 %v325_v42, %v904_v24  ;;  %v519_v59 = vmul.f32 %v1000_v56, %v495_v31  ;;  %v337_v29 = vadd.f32 %v321_v61, %v927_v45 }
  0xf3   :  { %v552_v24 = vmax.f32 %v536_v19, 0.0 }
  0xf7   :  { %v390_v32 = vpop.permute.xlu0 %389 }
  0xf8   :  { %v406_v33 = vpop.permute.xlu1 %405  ;;  %v420_v54 = vmul.f32 %v992_v1, %v390_v32 }
  0xf9   :  { %v424_v12 = vmul.f32 %v992_v1, %v406_v33 }
  0xfa   :  { %v386_v34 = vpop.permute.xlu2 %385  ;;  %v436_v42 = vadd.f32 %v420_v54, %v339_v38 }
  0xfb   :  { %v440_v37 = vadd.f32 %v424_v12, %v343_v52  ;;  %v419_v33 = vmul.f32 %v992_v1, %v386_v34 }
  0xfd   :  { %v435_v15 = vadd.f32 %v419_v33, %v338_v6 }
  0xff   :  { %v989_v46 = vpop.permute.xlu0 %369 }
 0x100   :  { %v398_v35 = vpop.permute.xlu1 %397  ;;  %v415_v20 = vmul.f32 %v992_v1, %v989_v46 }
 0x101   :  { %v422_v41 = vmul.f32 %v992_v1, %v398_v35 }
 0x102   :  { %v382_v40 = vpop.permute.xlu2 %381 }
 0x103   :  { %v438_v7 = vadd.f32 %v422_v41, %v341_v44  ;;  %v418_v2 = vmul.f32 %v992_v1, %v382_v40 }
 0x105   :  { %v535_v9 = vadd.f32 %v519_v59, %v438_v7  ;;  %v434_v43 = vadd.f32 %v418_v2, %v337_v29 }
 0x107   :  { %v551_v27 = vmax.f32 %v535_v9, 0.0 }
 0x108   :  { %v394_v57 = vpop.permute.xlu1 %393  ;;  %v503_v3 = vpop.permute.xlu0 %502 }
 0x109   :  { %v521_v60 = vmul.f32 %v1000_v56, %v503_v3  ;;  %v421_v17 = vmul.f32 %v992_v1, %v394_v57 }
 0x10b   :  { %v537_v63 = vadd.f32 %v521_v60, %v440_v37  ;;  %v479_v22 = vpop.permute.xlu2 %478  ;;  %v437_v0 = vadd.f32 %v421_v17, %v340_v21 }
 0x10c   :  { %v515_v26 = vmul.f32 %v1000_v56, %v479_v22 }
 0x10d   :  { %v553_v8 = vmax.f32 %v537_v63, 0.0 }
 0x10e   :  { %v531_v18 = vadd.f32 %v515_v26, %v434_v43 }
 0x10f   :  { %561 = vmatpush.msra.mxu0 %v553_v8 }
 0x110   :  { %v483_v31 = vpop.permute.xlu0 %482  ;;  %v547_v36 = vmax.f32 %v531_v18, 0.0 }
 0x111   :  { %v491_v23 = vpop.permute.xlu1 %490  ;;  %562 = vmatpush.msra.mxu0 %v552_v24  ;;  %v516_v13 = vmul.f32 %v1000_v56, %v483_v31 }
 0x112   :  { %v518_v11 = vmul.f32 %v1000_v56, %v491_v23 }
 0x113   :  { %563 = vmatpush.msra.mxu0 %v551_v27  ;;  %v475_v34 = vpop.permute.xlu2 %474  ;;  %v532_v53 = vadd.f32 %v516_v13, %v435_v15 }
 0x114   :  { %v534_v30 = vadd.f32 %v518_v11, %v437_v0  ;;  %v514_v45 = vmul.f32 %v1000_v56, %v475_v34 }
 0x115   :  { %v548_v12 = vmax.f32 %v532_v53, 0.0 }
 0x116   :  { %v550_v35 = vmax.f32 %v534_v30, 0.0 }
 0x118   :  { %564 = vmatpush.msra.mxu0 %v550_v35 }
 0x119   :  { %v487_v39 = vpop.permute.xlu1 %486 }
 0x11a   :  { %v517_v32 = vmul.f32 %v1000_v56, %v487_v39 }
 0x11c   :  { %v533_v47 = vadd.f32 %v517_v32, %v436_v42  ;;  %v366_v52 = vpop.permute.xlu2 %365 }
 0x11d   :  { %v414_v63 = vmul.f32 %v992_v1, %v366_v52 }
 0x11e   :  { %v549_v48 = vmax.f32 %v533_v47, 0.0 }
 0x11f   :  { %v430_v24 = vadd.f32 %v414_v63, %v944_v58 }
 0x120   :  { %565 = vmatpush.msra.mxu0 %v549_v48 }
 0x122   :  { %566 = vmatpush.msra.mxu0 %v548_v12  ;;  %v378_v41 = vpop.permute.xlu1 %377 }
 0x123   :  { %v417_v51 = vmul.f32 %v992_v1, %v378_v41 }
 0x124   :  { %567 = vmatpush.msra.mxu0 %v547_v36  ;;  %v362_v3 = vpop.permute.xlu2 %361 }
 0x125   :  { %v433_v44 = vadd.f32 %v417_v51, %v950_v62  ;;  %v463_v62 = vpop.permute.xlu0 %462  ;;  %v413_v21 = vmul.f32 %v992_v1, %v362_v3 }
 0x126   :  { %v511_v17 = vmul.f32 %v1000_v56, %v463_v62 }
 0x127   :  { %v530_v40 = vadd.f32 %v514_v45, %v433_v44  ;;  %v429_v0 = vadd.f32 %v413_v21, %v972_v50  ;;  %v555_v50 = vld [vmem:[%s1070_s4] sm:$0xff] }
 0x128   :  { %v527_v11 = vadd.f32 %v511_v17, %v430_v24  ;;  %558 = vperm.xlu0 %626, %v555_v50  }
 0x129   :  { %v546_v16 = vmax.f32 %v530_v40, 0.0 }
 0x12a   :  { %v374_v57 = vpop.permute.xlu1 %373  ;;  %v543_v30 = vmax.f32 %v527_v11, 0.0 }
 0x12b   :  { %568 = vmatpush.msra.mxu0 %v546_v16  ;;  %v416_v59 = vmul.f32 %v992_v1, %v374_v57 }
 0x12d   :  { %v432_v60 = vadd.f32 %v416_v59, %v980_v28  ;;  %v459_v9 = vpop.permute.xlu2 %458  ;;  %v431_v28 = vadd.f32 %v415_v20, %v969_v25  ;;  %v350_v15 = vpop.permute.xlu0 %349 }
 0x12e   :  { %v510_v23 = vmul.f32 %v1000_v56, %v459_v9  ;;  %v410_v32 = vmul.f32 %v992_v1, %v350_v15 }
 0x130   :  { %v526_v55 = vadd.f32 %v510_v23, %v429_v0  ;;  %v426_v48 = vadd.f32 %v410_v32, %v959_v4 }
 0x132   :  { %v542_v31 = vmax.f32 %v526_v55, 0.0 }
 0x133   :  { %v471_v7 = vpop.permute.xlu1 %470 }
 0x134   :  { %v513_v37 = vmul.f32 %v1000_v56, %v471_v7 }
 0x135   :  { %v455_v61 = vpop.permute.xlu2 %454 }
 0x136   :  { %v529_v19 = vadd.f32 %v513_v37, %v432_v60  ;;  %v509_v54 = vmul.f32 %v1000_v56, %v455_v61 }
 0x138   :  { %v545_v8 = vmax.f32 %v529_v19, 0.0 }
 0x13a   :  { %569 = vmatpush.msra.mxu0 %v545_v8 }
 0x13b   :  { %v467_v22 = vpop.permute.xlu1 %466 }
 0x13c   :  { %v512_v27 = vmul.f32 %v1000_v56, %v467_v22 }
 0x13e   :  { %v528_v46 = vadd.f32 %v512_v27, %v431_v28  ;;  %v346_v2 = vpop.permute.xlu2 %345 }
 0x13f   :  { %v409_v34 = vmul.f32 %v992_v1, %v346_v2 }
 0x140   :  { %v544_v5 = vmax.f32 %v528_v46, 0.0 }
 0x141   :  { %v425_v18 = vadd.f32 %v409_v34, %v921_v10 }
 0x142   :  { %570 = vmatpush.msra.mxu0 %v544_v5 }
 0x144   :  { %571 = vmatpush.msra.mxu0 %v543_v30  ;;  %v358_v58 = vpop.permute.xlu1 %357 }
 0x145   :  { %v412_v25 = vmul.f32 %v992_v1, %v358_v58 }
 0x146   :  { %572 = vmatpush.msra.mxu0 %v542_v31 }
 0x147   :  { %v428_v33 = vadd.f32 %v412_v25, %v932_v49  ;;  %v443_v49 = vpop.permute.xlu2 %442 }
 0x148   :  { %v506_v47 = vmul.f32 %v1000_v56, %v443_v49 }
 0x149   :  { %v525_v35 = vadd.f32 %v509_v54, %v428_v33 }
 0x14a   :  { %v522_v41 = vadd.f32 %v506_v47, %v425_v18 }
 0x14b   :  { %v541_v38 = vmax.f32 %v525_v35, 0.0 }
 0x14c   :  { %v354_v6 = vpop.permute.xlu1 %353  ;;  %v538_v45 = vmax.f32 %v522_v41, 0.0 }
 0x14d   :  { %573 = vmatpush.msra.mxu0 %v541_v38  ;;  %v411_v13 = vmul.f32 %v992_v1, %v354_v6  ;;  %v554_v1 = vld [vmem:[%s1069_s3] sm:$0xff] }
 0x14f   :  { %v427_v39 = vadd.f32 %v411_v13, %v962_v14 }
 0x155   :  { %v451_v29 = vpop.permute.xlu1 %450 }
 0x156   :  { %v508_v42 = vmul.f32 %v1000_v56, %v451_v29 }
 0x158   :  { %v524_v26 = vadd.f32 %v508_v42, %v427_v39 }
 0x15a   :  { %v540_v43 = vmax.f32 %v524_v26, 0.0 }
 0x15c   :  { %574 = vmatpush.msra.mxu0 %v540_v43 }
 0x15d   :  { %v447_v53 = vpop.permute.xlu1 %446 }
 0x15e   :  { %v507_v14 = vmul.f32 %v1000_v56, %v447_v53 }
 0x160   :  { %v523_v12 = vadd.f32 %v507_v14, %v426_v48 }
 0x162   :  { %v539_v36 = vmax.f32 %v523_v12, 0.0 }
 0x164   :  { %575 = vmatpush.msra.mxu0 %v539_v36 }
 0x166   :  { %576 = vmatpush.msra.mxu0 %v538_v45 }
 0x167   :  { %577 = vmatmul.f32.vlgmr.msra.gmra.mxu0 %v554_v1 }
 0x19a   :  { %v559_v51 = vpop.permute.xlu0 %558 }
 0x1e4   :  { %v578_v10 = vpop.f32.mrf.mxu0 }
 0x1e5   :  { %v579_v4 = vadd.f32 %v578_v10, %v559_v51 }
 0x1e7   :  { %581 = vst [vmem:[#allocation2] sm:$0xff] %v579_v4 }
 0x1e8   :  { %592 = dma.vmem_to_hbm [thread:$0]  %s588_s1, 128, %s590_s12, [#allocation3]  }
 0x1e9   :  { %651 = dma.done.wait [#allocation3], 128  }
 0x1ea   :  { %652 = vsyncadd [#allocation3], 4294967168 }
 0x1eb   :  { %597 = vsyncpa [#allocation3], 1 }

</bundles_post_ra>
